<compile_context>
chip_gen: v7x
topology: tpu7x:2x2x1
jax: 0.10.0
libtpu: 0.0.40
codegen_flags: <defaults>
</compile_context>

<pallas_src>
import jax
import jax.numpy as jnp
from jax.experimental import pallas as pl
from jax.experimental.pallas import tpu as pltpu


def _round_up(x, m):
    return ((x + m - 1) // m) * m


# ----------------------------------------------------------------------------
# Kernel.  grid = (batch tiles, node chunks); node axis is a reduction.
# ----------------------------------------------------------------------------
def io_b_kernel(x_ref, st_ref, adj_ref,
                w1_ref, w2_ref, b1_ref,
                we2e_ref, be2e_ref,
                we2n_ref, be2n_ref,
                wn2n_ref, bn2n_ref,
                wo1_ref, wo2_ref, bo_ref,
                out_ref,
                acc_ref, epart_ref):
    f32 = jnp.float32
    tb, tn, dim = x_ref.shape
    hp = we2e_ref.shape[0]
    cdt = w1_ref.dtype                       # MXU operand dtype (f32 or bf16)
    k = pl.program_id(1)

    @pl.when(k == 0)
    def _init():
        # ender/starter part of n2e is identical for every node chunk of this
        # batch tile: compute once, keep in VMEM scratch.  Accumulator to 0.
        st = st_ref[...].astype(cdt)
        epart_ref[...] = (jnp.dot(st, w2_ref[...], preferred_element_type=f32)
                          + b1_ref[...])
        acc_ref[...] = jnp.zeros_like(acc_ref)

    # --- n2e on cat([x, ender]) as split matmuls (implicit broadcast add) ----
    x2d = x_ref[...].reshape(tb * tn, dim).astype(cdt)           # in-kernel cast
    h = jnp.dot(x2d, w1_ref[...], preferred_element_type=f32)    # (TB*TN, hp)
    h = jnp.maximum(h.reshape(tb, tn, hp) + epart_ref[...][:, None, :], 0.0)

    # --- e2e + relu: one big (TB*TN, hp) GEMM ---------------------------------
    h = (jnp.dot(h.reshape(tb * tn, hp).astype(cdt), we2e_ref[...],
                 preferred_element_type=f32) + be2e_ref[...])
    h = jnp.maximum(h, 0.0).reshape(tb, tn, hp)

    # --- adjacency-weighted node sum: VPU multiply + sublane (XLU) reduce ----
    acc_ref[...] += jnp.sum(h * adj_ref[...][None, :, :], axis=1)   # (TB, hp)

    @pl.when(k == pl.num_programs(1) - 1)
    def _finalize():
        s = acc_ref[...]
        z = jnp.maximum(
            jnp.dot(s.astype(cdt), we2n_ref[...], preferred_element_type=f32)
            + be2n_ref[...], 0.0)
        z = jnp.maximum(
            jnp.dot(z.astype(cdt), wn2n_ref[...], preferred_element_type=f32)
            + bn2n_ref[...], 0.0)
        # output on cat([starter, z]) as split matmuls
        st = st_ref[...].astype(cdt)
        out = (jnp.dot(st, wo1_ref[...], preferred_element_type=f32)
               + jnp.dot(z.astype(cdt), wo2_ref[...], preferred_element_type=f32)
               + bo_ref[...])                                       # (TB, dpo)
        out_ref[...] = out.astype(out_ref.dtype)


# ----------------------------------------------------------------------------
# Parameter preparation (call ONCE, outside the hot path)
# ----------------------------------------------------------------------------
def _pad2(a, rows, cols):
    return jnp.pad(a, ((0, rows - a.shape[0]), (0, cols - a.shape[1])))


def prepare_params(params, dim, hid, compute_dtype=jnp.float32):
    """Pre-transpose, split and lane-pad the PyTorch-layout weights.

    PyTorch Linear: y = x @ W.T + b, W has shape (out_features, in_features).
    hid and the output width dim are zero-padded to multiples of 128 (lane
    axis); the math is unchanged.  Weights are cast to compute_dtype (f32 or
    bf16 for the MXU); biases stay f32 (accumulation / VPU path is f32).
    """
    hp = _round_up(hid, 128)
    dpo = _round_up(dim, 128)

    w_n2e = params["w_n2e"]                                   # (hid, 2*dim)
    w1 = _pad2(jnp.transpose(w_n2e[:, :dim]), dim, hp)        # node part
    w2 = _pad2(jnp.transpose(w_n2e[:, dim:]), dim, hp)        # ender part
    b1 = _pad2(params["b_n2e"][None, :], 1, hp)

    we2e = _pad2(jnp.transpose(params["w_e2e"]), hp, hp)
    be2e = _pad2(params["b_e2e"][None, :], 1, hp)
    we2n = _pad2(jnp.transpose(params["w_e2n"]), hp, hp)
    be2n = _pad2(params["b_e2n"][None, :], 1, hp)
    wn2n = _pad2(jnp.transpose(params["w_n2n"]), hp, hp)
    bn2n = _pad2(params["b_n2n"][None, :], 1, hp)

    w_out = params["w_out"]                                   # (dim, dim+hid)
    wo1 = _pad2(jnp.transpose(w_out[:, :dim]), dim, dpo)      # starter part
    wo2 = _pad2(jnp.transpose(w_out[:, dim:]), hp, dpo)       # hidden part
    bo = _pad2(params["b_out"][None, :], 1, dpo)

    c = lambda a: a.astype(compute_dtype)
    return {
        "dim": dim, "hid": hid, "hp": hp, "dpo": dpo, "dtype": compute_dtype,
        "w1": c(w1), "w2": c(w2), "b1": b1.astype(jnp.float32),
        "we2e": c(we2e), "be2e": be2e.astype(jnp.float32),
        "we2n": c(we2n), "be2n": be2n.astype(jnp.float32),
        "wn2n": c(wn2n), "bn2n": bn2n.astype(jnp.float32),
        "wo1": c(wo1), "wo2": c(wo2), "bo": bo.astype(jnp.float32),
    }


# ----------------------------------------------------------------------------
# Tile selection (VMEM-budgeted, generation-safe)
# ----------------------------------------------------------------------------
_VMEM_LIMIT_BYTES = 48 * 1024 * 1024   # < 64 MiB physical on v7x; fine on v5e/v6e
_VMEM_BUDGET_BYTES = 40 * 1024 * 1024  # headroom for compiler scratch / estimate slop


def _tile_vmem_bytes(tb, tn, dim, hp, dpo, w_bytes):
    x_blk = 2 * tb * tn * dim * 4              # double-buffered f32 x block
    st_blk = 2 * tb * dim * 4
    inter = 4 * tb * tn * hp * 4               # ~4 live (TB, TN, hp) f32 temporaries
    scratch = 2 * tb * hp * 4                  # accumulator + e_part
    out_blk = 2 * tb * dpo * 4
    return x_blk + st_blk + inter + scratch + out_blk + w_bytes


def _pick_tiles(B, N, dim, hp, dpo, w_bytes, block_b, block_n):
    tn = min(_round_up(N, 8), max(8, (block_n // 8) * 8))
    if B <= 8:
        tb = 8                                  # full 8-sublane blocks even for tiny B
    else:
        cap = max(8, (block_b // 8) * 8)
        # keep >=2 batch grid steps when B allows, so v7x megacore can split them
        half = max(8, ((_round_up(B, 8) // 2) // 8) * 8)
        tb = min(cap, half)
    while _tile_vmem_bytes(tb, tn, dim, hp, dpo, w_bytes) > _VMEM_BUDGET_BYTES:
        if tn >= tb and tn > 8:
            tn -= 8
        elif tb > 8:
            tb -= 8
        else:
            break
    return tb, tn


# ----------------------------------------------------------------------------
# Hot-path wrapper
# ----------------------------------------------------------------------------
def io_b_pallas(prepped, x, adj_col, i, *, block_b=256, block_n=128,
                out_dtype=jnp.float32):
    """x: (B, N, dim) f32; adj_col: (N,) f32; i: python int node index."""
    B, N, dim = x.shape
    assert dim == prepped["dim"]
    hp, dpo = prepped["hp"], prepped["dpo"]

    param_arrays = (prepped["w1"], prepped["w2"], prepped["b1"],
                    prepped["we2e"], prepped["be2e"],
                    prepped["we2n"], prepped["be2n"],
                    prepped["wn2n"], prepped["bn2n"],
                    prepped["wo1"], prepped["wo2"], prepped["bo"])
    w_bytes = 2 * sum(int(a.nbytes) for a in param_arrays)   # double-buffered

    tb, tn = _pick_tiles(B, N, dim, hp, dpo, w_bytes, block_b, block_n)

    starter = x[:, i, :]                                     # (B, dim), stays f32

    # Pad nodes to a multiple of the node chunk; padded nodes get adj == 0 so
    # they contribute exactly zero.  Pads are skipped when already aligned.
    Np = _round_up(N, tn)
    if Np != N:
        x = jnp.pad(x, ((0, 0), (0, Np - N), (0, 0)))
        adj_col = jnp.pad(adj_col, (0, Np - N))

    # Pad batch to a multiple of the batch tile (tail rows are discarded).
    Bp = pl.cdiv(B, tb) * tb
    if Bp != B:
        x = jnp.pad(x, ((0, Bp - B), (0, 0), (0, 0)))
        starter = jnp.pad(starter, ((0, Bp - B), (0, 0)))

    # Pre-broadcast adj to (Np, hp): the in-kernel scale becomes a plain VPU
    # multiply (no repeated lane broadcast).  Cost: Np*hp*4 bytes only.
    adj_bc = jnp.broadcast_to(adj_col.astype(jnp.float32)[:, None], (Np, hp))

    # NOTE: x / starter keep their input dtype (f32); if compute_dtype is bf16
    # the cast happens inside the kernel under MXU work, not as a separate
    # wrapper-side HBM round trip.

    def full(shape):
        n = len(shape)
        return pl.BlockSpec(shape, lambda b, k: (0,) * n)

    grid = (Bp // tb, Np // tn)
    grid_spec = pltpu.PrefetchScalarGridSpec(
        num_scalar_prefetch=0,
        grid=grid,
        in_specs=[
            pl.BlockSpec((tb, tn, dim), lambda b, k: (b, k, 0)),    # x chunk
            pl.BlockSpec((tb, dim), lambda b, k: (b, 0)),           # starter
            pl.BlockSpec((tn, hp), lambda b, k: (k, 0)),            # adj (pre-bcast)
            full((dim, hp)), full((dim, hp)), full((1, hp)),        # n2e split + bias
            full((hp, hp)), full((1, hp)),                          # e2e
            full((hp, hp)), full((1, hp)),                          # e2n
            full((hp, hp)), full((1, hp)),                          # n2n
            full((dim, dpo)), full((hp, dpo)), full((1, dpo)),      # output split + bias
        ],
        out_specs=pl.BlockSpec((tb, dpo), lambda b, k: (b, 0)),     # resident over k
        scratch_shapes=[pltpu.VMEM((tb, hp), jnp.float32),          # adj-sum accumulator
                        pltpu.VMEM((tb, hp), jnp.float32)],         # e_part (ender@w2+b)
    )

    # Advisory only (uses padded dims, so it overstates real work).
    flops = int(2 * Bp * Np * (dim * hp + hp * hp)
                + 2 * Bp * (dim * hp + 2 * hp * hp + dim * dpo + hp * dpo))
    bytes_accessed = int(x.nbytes + starter.nbytes + adj_bc.nbytes
                         + sum(int(a.nbytes) for a in param_arrays)
                         + Bp * dpo * jnp.dtype(out_dtype).itemsize)

    out = pl.pallas_call(
        io_b_kernel,
        out_shape=jax.ShapeDtypeStruct((Bp, dpo), out_dtype),
        grid_spec=grid_spec,
        compiler_params=pltpu.CompilerParams(
            dimension_semantics=("parallel", "arbitrary"),
            vmem_limit_bytes=_VMEM_LIMIT_BYTES),
        cost_estimate=pl.CostEstimate(
            flops=flops, transcendentals=0, bytes_accessed=bytes_accessed),
    )(x, starter, adj_bc, *param_arrays)

    return out[:B, :dim]                                     # (B, dim)


# ----------------------------------------------------------------------------
# Pure-JAX reference (transcription of the PyTorch forward, incl. chunk loop)
# ----------------------------------------------------------------------------
def io_b_reference(params, x, adj_col, i, num, node_size):
    starter = x[:, i, :]
    total = 0.0
    for n in range(num + 1):
        if n != num:
            cx = x[:, n * node_size:(n + 1) * node_size, :]
            ca = adj_col[n * node_size:(n + 1) * node_size]
        else:
            cx = x[:, n * node_size:, :]
            ca = adj_col[n * node_size:]
        ender = jnp.broadcast_to(x[:, i, :][:, None, :], cx.shape)
        c = jnp.concatenate([cx, ender], axis=2)
        c = jax.nn.relu(c @ params["w_n2e"].T + params["b_n2e"])
        c = jax.nn.relu(c @ params["w_e2e"].T + params["b_e2e"])
        c = c * ca[:, None]
        total = total + jnp.sum(c, axis=1)
    z = jax.nn.relu(total @ params["w_e2n"].T + params["b_e2n"])
    z = jax.nn.relu(z @ params["w_n2n"].T + params["b_n2n"])
    z = jnp.concatenate([starter, z], axis=-1)
    return z @ params["w_out"].T + params["b_out"]


def init_params(key, dim, hid):
    ks = jax.random.split(key, 10)

    def lin(kw, kb, out_f, in_f):
        bound = 1.0 / jnp.sqrt(in_f)
        w = jax.random.uniform(kw, (out_f, in_f), jnp.float32, -bound, bound)
        b = jax.random.uniform(kb, (out_f,), jnp.float32, -bound, bound)
        return w, b

    p = {}
    p["w_n2e"], p["b_n2e"] = lin(ks[0], ks[1], hid, 2 * dim)
    p["w_e2e"], p["b_e2e"] = lin(ks[2], ks[3], hid, hid)
    p["w_e2n"], p["b_e2n"] = lin(ks[4], ks[5], hid, hid)
    p["w_n2n"], p["b_n2n"] = lin(ks[6], ks[7], hid, hid)
    p["w_out"], p["b_out"] = lin(ks[8], ks[9], dim, dim + hid)
    return p


if __name__ == "__main__":
    key = jax.random.PRNGKey(0)

    # --- test 1: small shapes, f32 compute -----------------------------------
    B, N, dim, hid = 2, 16, 4, 32
    i, node_size, num = 3, 5, 3          # chunking args (semantically a no-op)
    kp, kx, ka = jax.random.split(key, 3)
    params = init_params(kp, dim, hid)
    x = jax.random.normal(kx, (B, N, dim), jnp.float32)
    adj_col = jax.random.uniform(ka, (N,), jnp.float32)

    prepped_f32 = prepare_params(params, dim, hid, compute_dtype=jnp.float32)
    out = jax.block_until_ready(io_b_pallas(prepped_f32, x, adj_col, i))
    ref = io_b_reference(params, x, adj_col, i, num, node_size)
    assert out.shape == (B, dim)
    assert jnp.allclose(out, ref, rtol=1e-3, atol=1e-3)

    # --- test 2: multi-tile grid (batch tiles x node chunks), f32 ------------
    B2, N2 = 40, 20
    kx2, ka2 = jax.random.split(jax.random.PRNGKey(1), 2)
    x2 = jax.random.normal(kx2, (B2, N2, dim), jnp.float32)
    adj2 = jax.random.uniform(ka2, (N2,), jnp.float32)
    out2 = jax.block_until_ready(
        io_b_pallas(prepped_f32, x2, adj2, i, block_b=16, block_n=8))
    ref2 = io_b_reference(params, x2, adj2, i, num=2, node_size=7)
    assert out2.shape == (B2, dim)
    assert jnp.allclose(out2, ref2, rtol=1e-3, atol=1e-3)

    # --- test 3: bf16 MXU operands (v6e/v7x fast path), f32 accumulation -----
    prepped_bf16 = prepare_params(params, dim, hid, compute_dtype=jnp.bfloat16)
    out_bf = jax.block_until_ready(
        io_b_pallas(prepped_bf16, x2, adj2, i, out_dtype=jnp.bfloat16))
    assert out_bf.shape == (B2, dim)
    assert jnp.allclose(out_bf.astype(jnp.float32), ref2, rtol=5e-2, atol=1.5e-1)

    print("KERNEL_OK")
</pallas_src>

<mosaic_0001>
module attributes {stable_mosaic.version = 11 : i64} {
  func.func @io_b_kernel(%arg0: i32, %arg1: i32, %arg2: memref<8x16x4xf32, #tpu.memory_space<vmem>>, %arg3: memref<8x4xf32, #tpu.memory_space<vmem>>, %arg4: memref<16x128xf32, #tpu.memory_space<vmem>>, %arg5: memref<4x128xf32, #tpu.memory_space<vmem>>, %arg6: memref<4x128xf32, #tpu.memory_space<vmem>>, %arg7: memref<1x128xf32, #tpu.memory_space<vmem>>, %arg8: memref<128x128xf32, #tpu.memory_space<vmem>>, %arg9: memref<1x128xf32, #tpu.memory_space<vmem>>, %arg10: memref<128x128xf32, #tpu.memory_space<vmem>>, %arg11: memref<1x128xf32, #tpu.memory_space<vmem>>, %arg12: memref<128x128xf32, #tpu.memory_space<vmem>>, %arg13: memref<1x128xf32, #tpu.memory_space<vmem>>, %arg14: memref<4x128xf32, #tpu.memory_space<vmem>>, %arg15: memref<128x128xf32, #tpu.memory_space<vmem>>, %arg16: memref<1x128xf32, #tpu.memory_space<vmem>>, %arg17: memref<8x128xf32, #tpu.memory_space<vmem>>, %arg18: memref<8x128xf32, #tpu.memory_space<vmem>>, %arg19: memref<8x128xf32, #tpu.memory_space<vmem>>) attributes {dimension_semantics = [#tpu.dimension_semantics<parallel>, #tpu.dimension_semantics<arbitrary>], iteration_bounds = array<i64: 1, 1>, scalar_prefetch = 0 : i64, scratch_operands = 2 : i64, tpu.core_type = #tpu.core_type<tc>, window_params = [{transform_indices = @transform_0, window_bounds = array<i64: 8, 16, 4>}, {transform_indices = @transform_1, window_bounds = array<i64: 8, 4>}, {transform_indices = @transform_2, window_bounds = array<i64: 16, 128>}, {pipeline_mode = #tpu.pipeline_mode<synchronous>, transform_indices = @transform_3, window_bounds = array<i64: 4, 128>}, {pipeline_mode = #tpu.pipeline_mode<synchronous>, transform_indices = @transform_4, window_bounds = array<i64: 4, 128>}, {pipeline_mode = #tpu.pipeline_mode<synchronous>, transform_indices = @transform_5, window_bounds = array<i64: 1, 128>}, {pipeline_mode = #tpu.pipeline_mode<synchronous>, transform_indices = @transform_6, window_bounds = array<i64: 128, 128>}, {pipeline_mode = #tpu.pipeline_mode<synchronous>, transform_indices = @transform_7, window_bounds = array<i64: 1, 128>}, {pipeline_mode = #tpu.pipeline_mode<synchronous>, transform_indices = @transform_8, window_bounds = array<i64: 128, 128>}, {pipeline_mode = #tpu.pipeline_mode<synchronous>, transform_indices = @transform_9, window_bounds = array<i64: 1, 128>}, {pipeline_mode = #tpu.pipeline_mode<synchronous>, transform_indices = @transform_10, window_bounds = array<i64: 128, 128>}, {pipeline_mode = #tpu.pipeline_mode<synchronous>, transform_indices = @transform_11, window_bounds = array<i64: 1, 128>}, {pipeline_mode = #tpu.pipeline_mode<synchronous>, transform_indices = @transform_12, window_bounds = array<i64: 4, 128>}, {pipeline_mode = #tpu.pipeline_mode<synchronous>, transform_indices = @transform_13, window_bounds = array<i64: 128, 128>}, {pipeline_mode = #tpu.pipeline_mode<synchronous>, transform_indices = @transform_14, window_bounds = array<i64: 1, 128>}, {transform_indices = @transform_15, window_bounds = array<i64: 8, 128>}]} {
    %c0_i32 = arith.constant 0 : i32
    %0 = arith.cmpi eq, %arg1, %c0_i32 : i32
    %1 = arith.extui %0 : i1 to i32
    %c0_i32_0 = arith.constant 0 : i32
    %2 = arith.cmpi ne, %1, %c0_i32_0 : i32
    scf.if %2 {
      %c0_23 = arith.constant 0 : index
      %c0_24 = arith.constant 0 : index
      %34 = vector.load %arg3[%c0_23, %c0_24] : memref<8x4xf32, #tpu.memory_space<vmem>>, vector<8x4xf32>
      %c0_25 = arith.constant 0 : index
      %c0_26 = arith.constant 0 : index
      %35 = vector.load %arg6[%c0_25, %c0_26] : memref<4x128xf32, #tpu.memory_space<vmem>>, vector<4x128xf32>
      %cst_27 = arith.constant dense<0.000000e+00> : vector<8x128xf32>
      %36 = tpu.matmul %34, %35, %cst_27 {dimension_numbers = #tpu.dot_dimension_numbers<[1], [0], [0], [1], [0, 0, 1, 1], [], []>} : vector<8x4xf32>, vector<4x128xf32>, vector<8x128xf32> -> vector<8x128xf32>
      %c0_28 = arith.constant 0 : index
      %c0_29 = arith.constant 0 : index
      %37 = vector.load %arg7[%c0_28, %c0_29] : memref<1x128xf32, #tpu.memory_space<vmem>>, vector<1x128xf32>
      %38 = vector.broadcast %37 : vector<1x128xf32> to vector<8x128xf32>
      %39 = arith.addf %36, %38 : vector<8x128xf32>
      %c0_30 = arith.constant 0 : index
      %c0_31 = arith.constant 0 : index
      %40 = vector.load %arg19[%c0_30, %c0_31] : memref<8x128xf32, #tpu.memory_space<vmem>>, vector<8x128xf32>
      tpu.vector_store %arg19[%c0_30, %c0_31], %39 {strides = array<i32>} : memref<8x128xf32, #tpu.memory_space<vmem>>, vector<8x128xf32>,
      %cst_32 = arith.constant 0.000000e+00 : f32
      %41 = vector.broadcast %cst_32 : f32 to vector<8x128xf32>
      %c0_33 = arith.constant 0 : index
      %c0_34 = arith.constant 0 : index
      %42 = vector.load %arg18[%c0_33, %c0_34] : memref<8x128xf32, #tpu.memory_space<vmem>>, vector<8x128xf32>
      tpu.vector_store %arg18[%c0_33, %c0_34], %41 {strides = array<i32>} : memref<8x128xf32, #tpu.memory_space<vmem>>, vector<8x128xf32>,
    } else {
    }
    %c0 = arith.constant 0 : index
    %c0_1 = arith.constant 0 : index
    %c0_2 = arith.constant 0 : index
    %3 = vector.load %arg2[%c0, %c0_1, %c0_2] : memref<8x16x4xf32, #tpu.memory_space<vmem>>, vector<8x16x4xf32>
    %4 = vector.shape_cast %3 : vector<8x16x4xf32> to vector<128x4xf32>
    %c0_3 = arith.constant 0 : index
    %c0_4 = arith.constant 0 : index
    %5 = vector.load %arg5[%c0_3, %c0_4] : memref<4x128xf32, #tpu.memory_space<vmem>>, vector<4x128xf32>
    %cst = arith.constant dense<0.000000e+00> : vector<128x128xf32>
    %6 = tpu.matmul %4, %5, %cst {dimension_numbers = #tpu.dot_dimension_numbers<[1], [0], [0], [1], [0, 0, 1, 1], [], []>} : vector<128x4xf32>, vector<4x128xf32>, vector<128x128xf32> -> vector<128x128xf32>
    %7 = vector.shape_cast %6 : vector<128x128xf32> to vector<8x16x128xf32>
    %c0_5 = arith.constant 0 : index
    %c0_6 = arith.constant 0 : index
    %8 = vector.load %arg19[%c0_5, %c0_6] : memref<8x128xf32, #tpu.memory_space<vmem>>, vector<8x128xf32>
    %9 = vector.shape_cast %8 : vector<8x128xf32> to vector<8x1x128xf32>
    %10 = vector.broadcast %9 : vector<8x1x128xf32> to vector<8x16x128xf32>
    %11 = arith.addf %7, %10 : vector<8x16x128xf32>
    %cst_7 = arith.constant 0.000000e+00 : f32
    %12 = vector.broadcast %cst_7 : f32 to vector<8x16x128xf32>
    %13 = arith.maximumf %11, %12 : vector<8x16x128xf32>
    %14 = vector.shape_cast %13 : vector<8x16x128xf32> to vector<128x128xf32>
    %c0_8 = arith.constant 0 : index
    %c0_9 = arith.constant 0 : index
    %15 = vector.load %arg8[%c0_8, %c0_9] : memref<128x128xf32, #tpu.memory_space<vmem>>, vector<128x128xf32>
    %cst_10 = arith.constant dense<0.000000e+00> : vector<128x128xf32>
    %16 = tpu.matmul %14, %15, %cst_10 {dimension_numbers = #tpu.dot_dimension_numbers<[1], [0], [0], [1], [0, 0, 1, 1], [], []>} : vector<128x128xf32>, vector<128x128xf32>, vector<128x128xf32> -> vector<128x128xf32>
    %c0_11 = arith.constant 0 : index
    %c0_12 = arith.constant 0 : index
    %17 = vector.load %arg9[%c0_11, %c0_12] : memref<1x128xf32, #tpu.memory_space<vmem>>, vector<1x128xf32>
    %18 = vector.broadcast %17 : vector<1x128xf32> to vector<128x128xf32>
    %19 = arith.addf %16, %18 : vector<128x128xf32>
    %cst_13 = arith.constant 0.000000e+00 : f32
    %20 = vector.broadcast %cst_13 : f32 to vector<128x128xf32>
    %21 = arith.maximumf %19, %20 : vector<128x128xf32>
    %22 = vector.shape_cast %21 : vector<128x128xf32> to vector<8x16x128xf32>
    %c0_14 = arith.constant 0 : index
    %c0_15 = arith.constant 0 : index
    %23 = vector.load %arg18[%c0_14, %c0_15] : memref<8x128xf32, #tpu.memory_space<vmem>>, vector<8x128xf32>
    %c0_16 = arith.constant 0 : index
    %c0_17 = arith.constant 0 : index
    %24 = vector.load %arg4[%c0_16, %c0_17] : memref<16x128xf32, #tpu.memory_space<vmem>>, vector<16x128xf32>
    %25 = vector.shape_cast %24 : vector<16x128xf32> to vector<1x16x128xf32>
    %26 = vector.broadcast %25 : vector<1x16x128xf32> to vector<8x16x128xf32>
    %27 = arith.mulf %22, %26 : vector<8x16x128xf32>
    %cst_18 = arith.constant dense<0.000000e+00> : vector<8x128xf32>
    %28 = vector.multi_reduction <add>, %27, %cst_18 [1] : vector<8x16x128xf32> to vector<8x128xf32>
    %29 = arith.addf %23, %28 : vector<8x128xf32>
    %c0_19 = arith.constant 0 : index
    %c0_20 = arith.constant 0 : index
    %30 = vector.load %arg18[%c0_19, %c0_20] : memref<8x128xf32, #tpu.memory_space<vmem>>, vector<8x128xf32>
    tpu.vector_store %arg18[%c0_19, %c0_20], %29 {strides = array<i32>} : memref<8x128xf32, #tpu.memory_space<vmem>>, vector<8x128xf32>,
    %c0_i32_21 = arith.constant 0 : i32
    %31 = arith.cmpi eq, %arg1, %c0_i32_21 : i32
    %32 = arith.extui %31 : i1 to i32
    %c0_i32_22 = arith.constant 0 : i32
    %33 = arith.cmpi ne, %32, %c0_i32_22 : i32
    scf.if %33 {
      %c0_23 = arith.constant 0 : index
      %c0_24 = arith.constant 0 : index
      %34 = vector.load %arg18[%c0_23, %c0_24] : memref<8x128xf32, #tpu.memory_space<vmem>>, vector<8x128xf32>
      %c0_25 = arith.constant 0 : index
      %c0_26 = arith.constant 0 : index
      %35 = vector.load %arg10[%c0_25, %c0_26] : memref<128x128xf32, #tpu.memory_space<vmem>>, vector<128x128xf32>
      %cst_27 = arith.constant dense<0.000000e+00> : vector<8x128xf32>
      %36 = tpu.matmul %34, %35, %cst_27 {dimension_numbers = #tpu.dot_dimension_numbers<[1], [0], [0], [1], [0, 0, 1, 1], [], []>} : vector<8x128xf32>, vector<128x128xf32>, vector<8x128xf32> -> vector<8x128xf32>
      %c0_28 = arith.constant 0 : index
      %c0_29 = arith.constant 0 : index
      %37 = vector.load %arg11[%c0_28, %c0_29] : memref<1x128xf32, #tpu.memory_space<vmem>>, vector<1x128xf32>
      %38 = vector.broadcast %37 : vector<1x128xf32> to vector<8x128xf32>
      %39 = arith.addf %36, %38 : vector<8x128xf32>
      %cst_30 = arith.constant 0.000000e+00 : f32
      %40 = vector.broadcast %cst_30 : f32 to vector<8x128xf32>
      %41 = arith.maximumf %39, %40 : vector<8x128xf32>
      %c0_31 = arith.constant 0 : index
      %c0_32 = arith.constant 0 : index
      %42 = vector.load %arg12[%c0_31, %c0_32] : memref<128x128xf32, #tpu.memory_space<vmem>>, vector<128x128xf32>
      %cst_33 = arith.constant dense<0.000000e+00> : vector<8x128xf32>
      %43 = tpu.matmul %41, %42, %cst_33 {dimension_numbers = #tpu.dot_dimension_numbers<[1], [0], [0], [1], [0, 0, 1, 1], [], []>} : vector<8x128xf32>, vector<128x128xf32>, vector<8x128xf32> -> vector<8x128xf32>
      %c0_34 = arith.constant 0 : index
      %c0_35 = arith.constant 0 : index
      %44 = vector.load %arg13[%c0_34, %c0_35] : memref<1x128xf32, #tpu.memory_space<vmem>>, vector<1x128xf32>
      %45 = vector.broadcast %44 : vector<1x128xf32> to vector<8x128xf32>
      %46 = arith.addf %43, %45 : vector<8x128xf32>
      %cst_36 = arith.constant 0.000000e+00 : f32
      %47 = vector.broadcast %cst_36 : f32 to vector<8x128xf32>
      %48 = arith.maximumf %46, %47 : vector<8x128xf32>
      %c0_37 = arith.constant 0 : index
      %c0_38 = arith.constant 0 : index
      %49 = vector.load %arg3[%c0_37, %c0_38] : memref<8x4xf32, #tpu.memory_space<vmem>>, vector<8x4xf32>
      %c0_39 = arith.constant 0 : index
      %c0_40 = arith.constant 0 : index
      %50 = vector.load %arg14[%c0_39, %c0_40] : memref<4x128xf32, #tpu.memory_space<vmem>>, vector<4x128xf32>
      %cst_41 = arith.constant dense<0.000000e+00> : vector<8x128xf32>
      %51 = tpu.matmul %49, %50, %cst_41 {dimension_numbers = #tpu.dot_dimension_numbers<[1], [0], [0], [1], [0, 0, 1, 1], [], []>} : vector<8x4xf32>, vector<4x128xf32>, vector<8x128xf32> -> vector<8x128xf32>
      %c0_42 = arith.constant 0 : index
      %c0_43 = arith.constant 0 : index
      %52 = vector.load %arg15[%c0_42, %c0_43] : memref<128x128xf32, #tpu.memory_space<vmem>>, vector<128x128xf32>
      %cst_44 = arith.constant dense<0.000000e+00> : vector<8x128xf32>
      %53 = tpu.matmul %48, %52, %cst_44 {dimension_numbers = #tpu.dot_dimension_numbers<[1], [0], [0], [1], [0, 0, 1, 1], [], []>} : vector<8x128xf32>, vector<128x128xf32>, vector<8x128xf32> -> vector<8x128xf32>
      %54 = arith.addf %51, %53 : vector<8x128xf32>
      %c0_45 = arith.constant 0 : index
      %c0_46 = arith.constant 0 : index
      %55 = vector.load %arg16[%c0_45, %c0_46] : memref<1x128xf32, #tpu.memory_space<vmem>>, vector<1x128xf32>
      %56 = vector.broadcast %55 : vector<1x128xf32> to vector<8x128xf32>
      %57 = arith.addf %54, %56 : vector<8x128xf32>
      %c0_47 = arith.constant 0 : index
      %c0_48 = arith.constant 0 : index
      %58 = vector.load %arg17[%c0_47, %c0_48] : memref<8x128xf32, #tpu.memory_space<vmem>>, vector<8x128xf32>
      tpu.vector_store %arg17[%c0_47, %c0_48], %57 {strides = array<i32>} : memref<8x128xf32, #tpu.memory_space<vmem>>, vector<8x128xf32>,
    } else {
    }
    return
  }
  func.func @transform_0(%arg0: i32, %arg1: i32) -> (i32, i32, i32) {
    %c0_i32 = arith.constant 0 : i32
    %c0_i32_0 = arith.constant 0 : i32
    return %arg0, %arg1, %c0_i32 : i32, i32, i32
  }
  func.func @transform_1(%arg0: i32, %arg1: i32) -> (i32, i32) {
    %c0_i32 = arith.constant 0 : i32
    %c0_i32_0 = arith.constant 0 : i32
    return %arg0, %c0_i32 : i32, i32
  }
  func.func @transform_2(%arg0: i32, %arg1: i32) -> (i32, i32) {
    %c0_i32 = arith.constant 0 : i32
    %c0_i32_0 = arith.constant 0 : i32
    return %arg1, %c0_i32 : i32, i32
  }
  func.func @transform_3(%arg0: i32, %arg1: i32) -> (i32, i32) {
    %c0_i32 = arith.constant 0 : i32
    %c0_i32_0 = arith.constant 0 : i32
    %c0_i32_1 = arith.constant 0 : i32
    return %c0_i32, %c0_i32_0 : i32, i32
  }
  func.func @transform_4(%arg0: i32, %arg1: i32) -> (i32, i32) {
    %c0_i32 = arith.constant 0 : i32
    %c0_i32_0 = arith.constant 0 : i32
    %c0_i32_1 = arith.constant 0 : i32
    return %c0_i32, %c0_i32_0 : i32, i32
  }
  func.func @transform_5(%arg0: i32, %arg1: i32) -> (i32, i32) {
    %c0_i32 = arith.constant 0 : i32
    %c0_i32_0 = arith.constant 0 : i32
    %c0_i32_1 = arith.constant 0 : i32
    return %c0_i32, %c0_i32_0 : i32, i32
  }
  func.func @transform_6(%arg0: i32, %arg1: i32) -> (i32, i32) {
    %c0_i32 = arith.constant 0 : i32
    %c0_i32_0 = arith.constant 0 : i32
    %c0_i32_1 = arith.constant 0 : i32
    return %c0_i32, %c0_i32_0 : i32, i32
  }
  func.func @transform_7(%arg0: i32, %arg1: i32) -> (i32, i32) {
    %c0_i32 = arith.constant 0 : i32
    %c0_i32_0 = arith.constant 0 : i32
    %c0_i32_1 = arith.constant 0 : i32
    return %c0_i32, %c0_i32_0 : i32, i32
  }
  func.func @transform_8(%arg0: i32, %arg1: i32) -> (i32, i32) {
    %c0_i32 = arith.constant 0 : i32
    %c0_i32_0 = arith.constant 0 : i32
    %c0_i32_1 = arith.constant 0 : i32
    return %c0_i32, %c0_i32_0 : i32, i32
  }
  func.func @transform_9(%arg0: i32, %arg1: i32) -> (i32, i32) {
    %c0_i32 = arith.constant 0 : i32
    %c0_i32_0 = arith.constant 0 : i32
    %c0_i32_1 = arith.constant 0 : i32
    return %c0_i32, %c0_i32_0 : i32, i32
  }
  func.func @transform_10(%arg0: i32, %arg1: i32) -> (i32, i32) {
    %c0_i32 = arith.constant 0 : i32
    %c0_i32_0 = arith.constant 0 : i32
    %c0_i32_1 = arith.constant 0 : i32
    return %c0_i32, %c0_i32_0 : i32, i32
  }
  func.func @transform_11(%arg0: i32, %arg1: i32) -> (i32, i32) {
    %c0_i32 = arith.constant 0 : i32
    %c0_i32_0 = arith.constant 0 : i32
    %c0_i32_1 = arith.constant 0 : i32
    return %c0_i32, %c0_i32_0 : i32, i32
  }
  func.func @transform_12(%arg0: i32, %arg1: i32) -> (i32, i32) {
    %c0_i32 = arith.constant 0 : i32
    %c0_i32_0 = arith.constant 0 : i32
    %c0_i32_1 = arith.constant 0 : i32
    return %c0_i32, %c0_i32_0 : i32, i32
  }
  func.func @transform_13(%arg0: i32, %arg1: i32) -> (i32, i32) {
    %c0_i32 = arith.constant 0 : i32
    %c0_i32_0 = arith.constant 0 : i32
    %c0_i32_1 = arith.constant 0 : i32
    return %c0_i32, %c0_i32_0 : i32, i32
  }
  func.func @transform_14(%arg0: i32, %arg1: i32) -> (i32, i32) {
    %c0_i32 = arith.constant 0 : i32
    %c0_i32_0 = arith.constant 0 : i32
    %c0_i32_1 = arith.constant 0 : i32
    return %c0_i32, %c0_i32_0 : i32, i32
  }
  func.func @transform_15(%arg0: i32, %arg1: i32) -> (i32, i32) {
    %c0_i32 = arith.constant 0 : i32
    %c0_i32_0 = arith.constant 0 : i32
    return %arg0, %c0_i32 : i32, i32
  }
}

</mosaic_0001>

<bundles_post_ra>
// kernel: tpu_custom_call.1
= control target key start
LH: loop header
LB: loop body
LE: loop exit
PB: predicated region body
PF: predicated region fallthrough
CT: control target
= control target key end

     0   :  { %20 = vsyncpa [#allocation5], 0  ;;  %s2116_s0 = inlined_call_operand.vmem [shape: f32[8,16,4], index: 0, kind: input, shape index: {}]   ;;  %s2117_s1 = inlined_call_operand.vmem [shape: f32[8,4], index: 1, kind: input, shape index: {}]   ;;  %s2118_s2 = inlined_call_operand.vmem [shape: f32[16,128], index: 2, kind: input, shape index: {}]   ;;  %s2119_s3 = inlined_call_operand.vmem [shape: f32[4,128], index: 3, kind: input, shape index: {}]   ;;  %s2120_s4 = inlined_call_operand.vmem [shape: f32[4,128], index: 4, kind: input, shape index: {}]   ;;  %s2121_s5 = inlined_call_operand.vmem [shape: f32[1,128], index: 5, kind: input, shape index: {}]   ;;  %s2122_s6 = inlined_call_operand.vmem [shape: f32[128,128], index: 6, kind: input, shape index: {}]   ;;  %s2123_s7 = inlined_call_operand.vmem [shape: f32[1,128], index: 7, kind: input, shape index: {}]   ;;  %s2124_s8 = inlined_call_operand.hbm [shape: f32[128,128], index: 8, kind: input, shape index: {}]   ;;  %s2125_s9 = inlined_call_operand.vmem [shape: f32[1,128], index: 9, kind: input, shape index: {}]   ;;  %s2126_s10 = inlined_call_operand.hbm [shape: f32[128,128], index: 10, kind: input, shape index: {}]   ;;  %s2127_s11 = inlined_call_operand.vmem [shape: f32[1,128], index: 11, kind: input, shape index: {}]   ;;  %s2128_s12 = inlined_call_operand.vmem [shape: f32[4,128], index: 12, kind: input, shape index: {}]   ;;  %s2129_s13 = inlined_call_operand.hbm [shape: f32[128,128], index: 13, kind: input, shape index: {}]   ;;  %s2130_s14 = inlined_call_operand.vmem [shape: f32[1,128], index: 14, kind: input, shape index: {}]   ;;  %s2131_s15 = inlined_call_operand.hbm [shape: f32[8,128], index: 15, kind: output, shape index: {}]  }
   0x1   :  { %21 = vsyncpa [#allocation8], 0 }
   0x2   :  { %22 = vsyncpa [#allocation6], 0  ;;  %s1723_s18 = smov [#allocation7]   ;;  %s1724_s20 = smov [#allocation4]  }
   0x3   :  { %s58_s19 = sshll.u32 %s1723_s18, 4  ;;  %s44_s21 = sshll.u32 %s1724_s20, 4  ;;  %s59_s19 = int_to_ptr.vmem [resolvable:$true] %s58_s19  ;;  %s1813_s21 = int_to_ptr.vmem [resolvable:$true] %s44_s21 }
   0x4   :  { %s1629_s24 = scalar_lea.hbm %s2126_s10, 2048 }
   0x5   :  { %p1630_p0 = scmp.ne.s32.totalorder %s2126_s10, %s1629_s24  ;;  %p1633_p1 = scmp.lt.u32.totalorder %s1629_s24, %s2126_s10 }
   0x7   :  { %p1635_p2 = pnand %p1633_p1, %p1630_p0 }
   0x9   :  { %1638 = shalt.err (!%p1635_p2)
}
   0xa   :  { %s1639_s29 = scalar_lea.vmem %s59_s19, 2048  ;;  %p1644_p4 = scmp.lt.s32.totalorder %s59_s19, %s59_s19 }
   0xb   :  { %p1640_p3 = scmp.ne.s32.totalorder %s59_s19, %s1639_s29  ;;  %p1645_p5 = scmp.lt.s32.totalorder %s1639_s29, %s1639_s29 }
   0xd   :  { %p1646_p6 = por %p1645_p5, %p1644_p4 }
   0xf   :  { %p1647_p7 = pnand %p1646_p6, %p1640_p3 }
  0x11   :  { %1650 = shalt.err (!%p1647_p7)
}
  0x12   :  { %s1725_s30 = smov 128   ;;  %s1726_s16 = smov 8  }
  0x13   :  { %64 = dma.hbm_to_vmem [thread:$0]  %s2126_s10, 2048, %s59_s19, [#allocation8], %s1725_s30, %s1725_s30, %s1726_s16  }
  0x14   :  { %s1651_s23 = scalar_lea.hbm %s2124_s8, 2048 }
  0x15   :  { %p1652_p8 = scmp.ne.s32.totalorder %s2124_s8, %s1651_s23  ;;  %p1655_p9 = scmp.lt.u32.totalorder %s1651_s23, %s2124_s8 }
  0x17   :  { %p1657_p10 = pnand %p1655_p9, %p1652_p8 }
  0x19   :  { %1660 = shalt.err (!%p1657_p10)
}
  0x1a   :  { %s1661_s28 = scalar_lea.vmem %s1813_s21, 2048  ;;  %p1666_p12 = scmp.lt.s32.totalorder %s1813_s21, %s1813_s21 }
  0x1b   :  { %p1662_p11 = scmp.ne.s32.totalorder %s1813_s21, %s1661_s28  ;;  %p1667_p13 = scmp.lt.s32.totalorder %s1661_s28, %s1661_s28 }
  0x1d   :  { %p1668_p0 = por %p1667_p13, %p1666_p12 }
  0x1f   :  { %p1669_p1 = pnand %p1668_p0, %p1662_p11 }
  0x21   :  { %1672 = shalt.err (!%p1669_p1)
}
  0x22   :  { %50 = dma.hbm_to_vmem [thread:$0]  %s2124_s8, 2048, %s1813_s21, [#allocation5], %s1725_s30, %s1725_s30, %s1726_s16  }
  0x23   :  { %s1727_s29 = smov [#allocation9]   ;;  %s1673_s22 = scalar_lea.hbm %s2129_s13, 2048 }
  0x24   :  { %s74_s17 = sshll.u32 %s1727_s29, 4  ;;  %p1674_p2 = scmp.ne.s32.totalorder %s2129_s13, %s1673_s22  ;;  %s75_s17 = int_to_ptr.vmem [resolvable:$true] %s74_s17 }
  0x25   :  { %p1677_p3 = scmp.lt.u32.totalorder %s1673_s22, %s2129_s13 }
  0x27   :  { %p1679_p4 = pnand %p1677_p3, %p1674_p2 }
  0x29   :  { %1682 = shalt.err (!%p1679_p4)
}
  0x2a   :  { %s1683_s27 = scalar_lea.vmem %s75_s17, 2048  ;;  %p1688_p6 = scmp.lt.s32.totalorder %s75_s17, %s75_s17 }
  0x2b   :  { %p1684_p5 = scmp.ne.s32.totalorder %s75_s17, %s1683_s27  ;;  %p1689_p7 = scmp.lt.s32.totalorder %s1683_s27, %s1683_s27 }
  0x2d   :  { %p1690_p8 = por %p1689_p7, %p1688_p6 }
  0x2f   :  { %p1691_p9 = pnand %p1690_p8, %p1684_p5 }
  0x31   :  { %1694 = shalt.err (!%p1691_p9)
}
  0x32   :  { %80 = dma.hbm_to_vmem [thread:$0]  %s2129_s13, 2048, %s75_s17, [#allocation8], %s1725_s30, %s1725_s30, %s1726_s16  }
  0x33   :  { %1717 = dma.done.wait [#allocation5], 2048  }
  0x34   :  { %1718 = vsyncadd [#allocation5], 4294965248 }
  0x35   :  { %1719 = dma.done.wait [#allocation8], 4096  }
  0x36   :  { %1720 = vsyncadd [#allocation8], 4294963200  ;;  %v1728_v0 = vmov 0.0   ;;  %vm1729_vm0 = vmmov 0   ;;  %vm109_vm1 = vcmask 1043456   ;;  %vm105_vm2 = vcmask 31744  }
  0x37   :  { %1318 = vmatprep.subr.mxu0 %v1728_v0  ;;  %1320 = vmatprep.mubr.msk.f32.mxu0 %vm1729_vm0, %v1728_v0  ;;  %v97_v1 = vld [vmem:[%s2120_s4] sm:$0xf]  ;;  %v186_v5 = vld [vmem:[%s2116_s0 + $0x8] sm:$0xff]  ;;  %v187_v6 = vld [vmem:[%s2116_s0 + $0x10] sm:$0xff]  ;;  %v1730_v44 = vmov 1966171168   ;;  %v406_v46 = vlaneseq }
  0x38   :  { %v201_v2 = vld [vmem:[%s2119_s3] sm:$0xf]  ;;  %1319 = vmatpush3.msk.msra.mxu0 %vm109_vm1, %v97_v1  ;;  %v188_v7 = vld [vmem:[%s2116_s0 + $0x18] sm:$0xff]  ;;  %v524_v10 = vld [vmem:[%s2122_s6 + $0x8] sm:$0xff]  ;;  %v404_v45 = vunpack.c.l.s4 %v1730_v44  ;;  %vm790_vm3 = vcmask 1041409   ;;  %vm792_vm4 = vcmask 1042434  }
  0x39   :  { %v1877_v3 = vld [vmem:[%s2117_s1] sm:$0xff]  ;;  %1323 = vmatprep.subr.msk.mxu1 %vm109_vm1, %v201_v2  ;;  %v525_v12 = vld [vmem:[%s2122_s6 + $0x10] sm:$0xff]  ;;  %v526_v13 = vld [vmem:[%s2122_s6 + $0x18] sm:$0xff]  ;;  %v407_v48 = vshrl.u32 %v406_v46, 7  ;;  %vm794_vm5 = vcmask 1043459   ;;  %vm796_vm6 = vcmask 1044484  }
  0x3a   :  { %v185_v4 = vld [vmem:[%s2116_s0] sm:$0xff]  ;;  %1321 = vmatmul.mubr.msk.f32.vlgmr.msra.gmra.mrb[0].mxu0 %vm105_vm2, %v1877_v3  ;;  %1324 = vmatpush3.msk.msra.mxu1 %vm109_vm1, %v201_v2  ;;  %v1519_v14 = vpack.c.bf16 %v526_v13, %v525_v12  ;;  %v528_v16 = vld [vmem:[%s2122_s6 + $0x28] sm:$0xff]  ;;  %v191_v18 = vld [vmem:[%s2116_s0 + $0x30] sm:$0xff]  ;;  %v405_v47 = vunpack.c.0.s8 %v404_v45  ;;  %vm798_vm7 = vcmask 1045509   ;;  %vm800_vm8 = vcmask 1046534   ;;  %s1732_s25 = smov [#allocation10]  }
  0x3b   :  { %1325 = vmatprep.mubr.msk.f32.mxu1 %vm105_vm2, %v185_v4  ;;  %v189_v8 = vld [vmem:[%s2116_s0 + $0x20] sm:$0xff]  ;;  %v190_v17 = vld [vmem:[%s2116_s0 + $0x28] sm:$0xff]  ;;  %v529_v20 = vld [vmem:[%s2122_s6 + $0x30] sm:$0xff]  ;;  %v2001_v56 = vsub.s32 0, %v407_v48  ;;  %vm802_vm9 = vcmask 1047559   ;;  %s1178_s26 = sshll.u32 %s1732_s25, 4  ;;  %s1179_s26 = int_to_ptr.vmem [resolvable:$true] %s1178_s26 }
  0x3c   :  { %1326 = vmatmul.mubr.msk.f32.vlgmr.msra.gmra.mrb[0].mxu1 %vm105_vm2, %v186_v5  ;;  %v523_v9 = vld [vmem:[%s2122_s6] sm:$0xff]  ;;  %v530_v21 = vld [vmem:[%s2122_s6 + $0x38] sm:$0xff]  ;;  %v532_v26 = vld [vmem:[%s2122_s6 + $0x48] sm:$0xff]  ;;  %v408_v50 = vsub.s32 %v405_v47, %v407_v48  ;;  %p1700_p11 = scmp.lt.s32.totalorder %s1179_s26, %s1179_s26 }
  0x3d   :  { %1328 = vmatprep.mubr.msk.f32.mxu1 %vm105_vm2, %v187_v6  ;;  %v1515_v11 = vpack.c.bf16 %v524_v10, %v523_v9  ;;  %v527_v15 = vld [vmem:[%s2122_s6 + $0x20] sm:$0xff]  ;;  %v192_v22 = vld [vmem:[%s2116_s0 + $0x38] sm:$0xff]  ;;  %v1527_v24 = vpack.c.bf16 %v530_v21, %v529_v20  ;;  %v194_v27 = vld [vmem:[%s2116_s0 + $0x48] sm:$0xff] }
  0x3e   :  { %v1523_v19 = vpack.c.bf16 %v528_v16, %v527_v15  ;;  %v193_v23 = vld [vmem:[%s2116_s0 + $0x40] sm:$0xff]  ;;  %v195_v28 = vld [vmem:[%s2116_s0 + $0x50] sm:$0xff]  ;;  %v196_v30 = vld [vmem:[%s2116_s0 + $0x58] sm:$0xff] }
  0x3f   :  { %1516 = vmatprep.subr.bf16.mxu0 %v1515_v11  ;;  %v531_v25 = vld [vmem:[%s2122_s6 + $0x40] sm:$0xff]  ;;  %v198_v32 = vld [vmem:[%s2116_s0 + $0x68] sm:$0xff]  ;;  %v199_v33 = vld [vmem:[%s2116_s0 + $0x70] sm:$0xff] }
  0x40   :  { %1329 = vmatmul.mubr.msk.f32.gmra.mrb[2].mxu1 %vm105_vm2, %v188_v7  ;;  %1518 = vmatpush3.bf16.msra.mxu0 %v1515_v11  ;;  %v1531_v29 = vpack.c.bf16 %v532_v26, %v531_v25  ;;  %v197_v31 = vld [vmem:[%s2116_s0 + $0x60] sm:$0xff]  ;;  %v200_v34 = vld [vmem:[%s2116_s0 + $0x78] sm:$0xff]  ;;  %v533_v35 = vld [vmem:[%s2122_s6 + $0x50] sm:$0xff] }
  0x41   :  { %1331 = vmatprep.mubr.msk.f32.mxu1 %vm105_vm2, %v189_v8  ;;  %1520 = vmatprep.subr.bf16.mxu0 %v1519_v14  ;;  %v534_v36 = vld [vmem:[%s2122_s6 + $0x58] sm:$0xff]  ;;  %v535_v38 = vld [vmem:[%s2122_s6 + $0x60] sm:$0xff]  ;;  %v536_v39 = vld [vmem:[%s2122_s6 + $0x68] sm:$0xff] }
  0x42   :  { %v1535_v37 = vpack.c.bf16 %v534_v36, %v533_v35  ;;  %v1539_v40 = vpack.c.bf16 %v536_v39, %v535_v38  ;;  %v537_v41 = vld [vmem:[%s2122_s6 + $0x70] sm:$0xff]  ;;  %v538_v42 = vld [vmem:[%s2122_s6 + $0x78] sm:$0xff]  ;;  %v1188_v49 = vld [vmem:[%s2121_s5] ss:$0 sm:$0xff] }
  0x43   :  { %v1543_v43 = vpack.c.bf16 %v538_v42, %v537_v41 }
  0x44   :  { %1332 = vmatmul.mubr.msk.f32.gmra.mrb[4].mxu1 %vm105_vm2, %v190_v17  ;;  %1522 = vmatpush3.bf16.msra.mxu0 %v1519_v14 }
  0x45   :  { %1334 = vmatprep.mubr.msk.f32.mxu1 %vm105_vm2, %v191_v18  ;;  %1524 = vmatprep.subr.bf16.mxu0 %v1523_v19 }
  0x48   :  { %1335 = vmatmul.mubr.msk.f32.gmra.mrb[6].mxu1 %vm105_vm2, %v192_v22  ;;  %1526 = vmatpush3.bf16.msra.mxu0 %v1523_v19 }
  0x49   :  { %1337 = vmatprep.mubr.msk.f32.mxu1 %vm105_vm2, %v193_v23  ;;  %1528 = vmatprep.subr.bf16.mxu0 %v1527_v24 }
  0x4c   :  { %1338 = vmatmul.mubr.msk.f32.gmra.mrb[8].mxu1 %vm105_vm2, %v194_v27  ;;  %1530 = vmatpush3.bf16.msra.mxu0 %v1527_v24 }
  0x4d   :  { %1340 = vmatprep.mubr.msk.f32.mxu1 %vm105_vm2, %v195_v28  ;;  %1532 = vmatprep.subr.bf16.mxu0 %v1531_v29 }
  0x50   :  { %1341 = vmatmul.mubr.msk.f32.gmra.mrb[10].mxu1 %vm105_vm2, %v196_v30  ;;  %1534 = vmatpush3.bf16.msra.mxu0 %v1531_v29 }
  0x51   :  { %1343 = vmatprep.mubr.msk.f32.mxu1 %vm105_vm2, %v197_v31  ;;  %1536 = vmatprep.subr.bf16.mxu0 %v1535_v37 }
  0x54   :  { %1344 = vmatmul.mubr.msk.f32.gmra.mrb[12].mxu1 %vm105_vm2, %v198_v32  ;;  %1538 = vmatpush3.bf16.msra.mxu0 %v1535_v37 }
  0x55   :  { %1346 = vmatprep.mubr.msk.f32.mxu1 %vm105_vm2, %v199_v33  ;;  %1540 = vmatprep.subr.bf16.mxu0 %v1539_v40 }
  0x58   :  { %1347 = vmatmul.mubr.msk.f32.gmra.mrb[14].mxu1 %vm105_vm2, %v200_v34  ;;  %1542 = vmatpush3.bf16.msra.mxu0 %v1539_v40 }
  0x59   :  { %1437 = vmatprep.mubr.msk.f32.mxu1 %vm1729_vm0, %v1728_v0  ;;  %1544 = vmatprep.subr.bf16.mxu0 %v1543_v43 }
  0x5c   :  { %1546 = vmatpush3.bf16.msra.mxu0 %v1543_v43 }
 0x10d   :  { %v179_v51 = vpop.f32.mrb[0].mxu0 }
 0x10e   :  { %v180_v52 = vadd.f32 %v1188_v49, %v179_v51  ;;  %v1322_v53 = vpop.f32.mrb[1].mxu0 }
 0x10f   :  { %v1327_v54 = vpop.f32.mrb[0].mxu1 }
 0x110   :  { %v409_v55 = vrot.slane %v180_v52, %v408_v50  ;;  %v321_v57 = vpop.f32.mrb[1].mxu1  ;;  %v402_v58 = vcombine.high %v180_v52, %v180_v52 }
 0x112   :  { %v417_v59 = vcombine.high %v409_v55, %v409_v55  ;;  %v425_v60 = vrot.slane %v409_v55, %v408_v50  ;;  %v416_v4 = vrot.slane %v402_v58, %v408_v50 }
 0x113   :  { %v1330_v61 = vpop.f32.mrb[2].mxu1 }
 0x114   :  { %v454_v62 = vrot.slane %v425_v60, %v2001_v56  ;;  %v439_v63 = vrot.slane %v417_v59, %v408_v50  ;;  %v331_v1 = vpop.f32.mrb[3].mxu1  ;;  %v447_v2 = vcombine.high %v425_v60, %v425_v60  ;;  %v432_v20 = vrot.slane %v416_v4, %v408_v50 }
 0x115   :  { %v418_v21 = vcombine.high %v416_v4, %v416_v4  ;;  %v813_v4 = vld [vmem:[#allocation4 + $0x10] sm:$0xff] }
 0x116   :  { %v492_v5 = vadd.f32 %v1327_v54, %v454_v62  ;;  %v491_v6 = vadd.f32 %v454_v62, %v321_v57  ;;  %v458_v7 = vrot.slane %v439_v63, %v2001_v56  ;;  %v462_v8 = vrot.slane %v447_v2, %v2001_v56 }
 0x117   :  { %v1333_v9 = vpop.f32.mrb[4].mxu1  ;;  %v449_v10 = vcombine.high %v439_v63, %v439_v63  ;;  %v470_v28 = vrot.slane %v432_v20, %v2001_v56  ;;  %v446_v29 = vrot.slane %v418_v21, %v408_v50  ;;  %v448_v37 = vcombine.high %v432_v20, %v432_v20  ;;  %v812_v63 = vld [vmem:[#allocation4 + $0x8] sm:$0xff] }
 0x118   :  { %v508_v11 = vmax.f32 %v492_v5, 0.0  ;;  %v507_v12 = vmax.f32 %v491_v6, 0.0  ;;  %v494_v13 = vadd.f32 %v1330_v61, %v458_v7  ;;  %v493_v14 = vadd.f32 %v458_v7, %v331_v1  ;;  %v341_v15 = vpop.f32.mrb[5].mxu1  ;;  %v814_v5 = vld [vmem:[#allocation4 + $0x18] sm:$0xff]  ;;  %v815_v7 = vld [vmem:[#allocation4 + $0x20] sm:$0xff]  ;;  %v824_v20 = vld [vmem:[#allocation4 + $0x68] sm:$0xff] }
 0x119   :  { %v496_v16 = vadd.f32 %v1333_v9, %v462_v8  ;;  %v495_v17 = vadd.f32 %v462_v8, %v341_v15  ;;  %v466_v18 = vrot.slane %v449_v10, %v2001_v56  ;;  %v474_v36 = vrot.slane %v446_v29, %v2001_v56  ;;  %v816_v8 = vld [vmem:[#allocation4 + $0x28] sm:$0xff]  ;;  %v817_v10 = vld [vmem:[#allocation4 + $0x30] sm:$0xff] }
 0x11a   :  { %v509_v19 = vmax.f32 %v493_v14, 0.0  ;;  %1381 = vmatprep.mubr.f32.mxu0 %v507_v12  ;;  %v510_v25 = vmax.f32 %v494_v13, 0.0  ;;  %v478_v44 = vrot.slane %v448_v37, %v2001_v56  ;;  %v450_v45 = vcombine.high %v446_v29, %v446_v29  ;;  %v819_v13 = vld [vmem:[#allocation4 + $0x40] sm:$0xff]  ;;  %v820_v14 = vld [vmem:[#allocation4 + $0x48] sm:$0xff]  ;;  %v908_v29 = vld [vmem:[#allocation7 + $0x18] sm:$0xff] }
 0x11b   :  { %v1336_v22 = vpop.f32.mrb[6].mxu1  ;;  %1382 = vmatmul.mubr.f32.vlgmr.msra.gmra.mrb[2].mxu0 %v508_v11  ;;  %v511_v27 = vmax.f32 %v495_v17, 0.0  ;;  %v512_v33 = vmax.f32 %v496_v16, 0.0  ;;  %v1731_v2 = vmov 0.0|0.0   ;;  %v1551_v6 = vpack.c.bf16 %v814_v5, %v813_v4  ;;  %v818_v11 = vld [vmem:[#allocation4 + $0x38] sm:$0xff]  ;;  %v821_v16 = vld [vmem:[#allocation4 + $0x50] sm:$0xff] }
 0x11c   :  { %v498_v23 = vadd.f32 %v1336_v22, %v466_v18  ;;  %v351_v24 = vpop.f32.mrb[7].mxu1  ;;  %1384 = vmatprep.mubr.f32.mxu0 %v509_v19  ;;  %v482_v52 = vrot.slane %v450_v45, %v2001_v56  ;;  %v811_v56 = vld [vmem:[#allocation4] sm:$0xff]  ;;  %1547 = vmatprep.subr.bf16.mxu1 %v1731_v2  ;;  %v1554_v9 = vpack.c.bf16 %v816_v8, %v815_v7  ;;  %v822_v17 = vld [vmem:[#allocation4 + $0x58] sm:$0xff]  ;;  %v825_v22 = vld [vmem:[#allocation4 + $0x70] sm:$0xff] }
 0x11d   :  { %v497_v26 = vadd.f32 %v466_v18, %v351_v24  ;;  %v1548_v1 = vpack.c.bf16 %v812_v63, %v811_v56  ;;  %1571 = vmatprep.subr.bf16.mxu0 %v1731_v2  ;;  %v1557_v12 = vpack.c.bf16 %v818_v11, %v817_v10  ;;  %v1560_v15 = vpack.c.bf16 %v820_v14, %v819_v13  ;;  %v823_v19 = vld [vmem:[#allocation4 + $0x60] sm:$0xff] }
 0x11e   :  { %v514_v41 = vmax.f32 %v498_v23, 0.0  ;;  %v1563_v18 = vpack.c.bf16 %v822_v17, %v821_v16  ;;  %v1566_v21 = vpack.c.bf16 %v824_v20, %v823_v19  ;;  %v826_v23 = vld [vmem:[#allocation4 + $0x78] sm:$0xff]  ;;  %v913_v37 = vld [vmem:[#allocation7 + $0x40] sm:$0xff] }
 0x11f   :  { %v1339_v30 = vpop.f32.mrb[8].mxu1  ;;  %1385 = vmatmul.mubr.f32.gmra.mrb[4].mxu0 %v510_v25  ;;  %v513_v35 = vmax.f32 %v497_v26, 0.0  ;;  %1549 = vmatpush3.bf16.msra.mxu1 %v1548_v1  ;;  %v1569_v24 = vpack.c.bf16 %v826_v23, %v825_v22  ;;  %v905_v25 = vld [vmem:[#allocation7] sm:$0xff]  ;;  %v906_v26 = vld [vmem:[#allocation7 + $0x8] sm:$0xff] }
 0x120   :  { %v500_v31 = vadd.f32 %v1339_v30, %v470_v28  ;;  %v361_v32 = vpop.f32.mrb[9].mxu1  ;;  %1387 = vmatprep.mubr.f32.mxu0 %v511_v27  ;;  %1550 = vmatprep.subr.bf16.mxu1 %v1731_v2  ;;  %v907_v27 = vld [vmem:[#allocation7 + $0x10] sm:$0xff] }
 0x121   :  { %v499_v34 = vadd.f32 %v470_v28, %v361_v32  ;;  %v1572_v28 = vpack.c.bf16 %v906_v26, %v905_v25  ;;  %v1575_v30 = vpack.c.bf16 %v908_v29, %v907_v27  ;;  %v910_v32 = vld [vmem:[#allocation7 + $0x28] sm:$0xff] }
 0x122   :  { %v516_v49 = vmax.f32 %v500_v31, 0.0  ;;  %v909_v31 = vld [vmem:[#allocation7 + $0x20] sm:$0xff] }
 0x123   :  { %v1342_v38 = vpop.f32.mrb[10].mxu1  ;;  %1388 = vmatmul.mubr.f32.gmra.mrb[6].mxu0 %v512_v33  ;;  %v515_v43 = vmax.f32 %v499_v34, 0.0  ;;  %1552 = vmatpush3.bf16.msra.mxu1 %v1551_v6  ;;  %v1578_v33 = vpack.c.bf16 %v910_v32, %v909_v31  ;;  %v911_v34 = vld [vmem:[#allocation7 + $0x30] sm:$0xff] }
 0x124   :  { %v502_v39 = vadd.f32 %v1342_v38, %v474_v36  ;;  %v371_v40 = vpop.f32.mrb[11].mxu1  ;;  %1390 = vmatprep.mubr.f32.mxu0 %v513_v35  ;;  %1553 = vmatprep.subr.bf16.mxu1 %v1731_v2  ;;  %v912_v35 = vld [vmem:[#allocation7 + $0x38] sm:$0xff]  ;;  %v914_v38 = vld [vmem:[#allocation7 + $0x48] sm:$0xff] }
 0x125   :  { %v501_v42 = vadd.f32 %v474_v36, %v371_v40  ;;  %1573 = vmatpush3.bf16.msra.mxu0 %v1572_v28  ;;  %v1581_v36 = vpack.c.bf16 %v912_v35, %v911_v34  ;;  %v915_v40 = vld [vmem:[#allocation7 + $0x50] sm:$0xff] }
 0x126   :  { %v518_v57 = vmax.f32 %v502_v39, 0.0  ;;  %1574 = vmatprep.subr.bf16.mxu0 %v1731_v2  ;;  %v1584_v39 = vpack.c.bf16 %v914_v38, %v913_v37 }
 0x127   :  { %v1345_v46 = vpop.f32.mrb[12].mxu1  ;;  %1391 = vmatmul.mubr.f32.gmra.mrb[8].mxu0 %v514_v41  ;;  %v517_v51 = vmax.f32 %v501_v42, 0.0  ;;  %1555 = vmatpush3.bf16.msra.mxu1 %v1554_v9  ;;  %v916_v41 = vld [vmem:[#allocation7 + $0x58] sm:$0xff] }
 0x128   :  { %v504_v47 = vadd.f32 %v1345_v46, %v478_v44  ;;  %v381_v48 = vpop.f32.mrb[13].mxu1  ;;  %1393 = vmatprep.mubr.f32.mxu0 %v515_v43  ;;  %1556 = vmatprep.subr.bf16.mxu1 %v1731_v2  ;;  %v1587_v42 = vpack.c.bf16 %v916_v41, %v915_v40  ;;  %v917_v43 = vld [vmem:[#allocation7 + $0x60] sm:$0xff] }
 0x129   :  { %v503_v50 = vadd.f32 %v478_v44, %v381_v48  ;;  %1576 = vmatpush3.bf16.msra.mxu0 %v1575_v30  ;;  %v918_v44 = vld [vmem:[#allocation7 + $0x68] sm:$0xff]  ;;  %v2033_v46 = vld [vmem:[%s2123_s7] ss:$0 sm:$0xff] }
 0x12a   :  { %v520_v60 = vmax.f32 %v504_v47, 0.0  ;;  %1577 = vmatprep.subr.bf16.mxu0 %v1731_v2  ;;  %v1590_v45 = vpack.c.bf16 %v918_v44, %v917_v43 }
 0x12b   :  { %v1348_v53 = vpop.f32.mrb[14].mxu1  ;;  %1394 = vmatmul.mubr.f32.gmra.mrb[10].mxu0 %v516_v49  ;;  %v519_v59 = vmax.f32 %v503_v50, 0.0  ;;  %1558 = vmatpush3.bf16.msra.mxu1 %v1557_v12  ;;  %v2039_v50 = vld [vmem:[%s2118_s2 + $0x8] sm:$0xff] }
 0x12c   :  { %v506_v54 = vadd.f32 %v1348_v53, %v482_v52  ;;  %v391_v55 = vpop.f32.mrb[15].mxu1  ;;  %1396 = vmatprep.mubr.f32.mxu0 %v517_v51  ;;  %1559 = vmatprep.subr.bf16.mxu1 %v1731_v2  ;;  %v2045_v53 = vld [vmem:[%s2118_s2] sm:$0xff] }
 0x12d   :  { %v505_v58 = vadd.f32 %v482_v52, %v391_v55  ;;  %1579 = vmatpush3.bf16.msra.mxu0 %v1578_v33 }
 0x12e   :  { %v522_v62 = vmax.f32 %v506_v54, 0.0  ;;  %1580 = vmatprep.subr.bf16.mxu0 %v1731_v2 }
 0x12f   :  { %1397 = vmatmul.mubr.f32.gmra.mrb[12].mxu0 %v518_v57  ;;  %v521_v61 = vmax.f32 %v505_v58, 0.0  ;;  %1561 = vmatpush3.bf16.msra.mxu1 %v1560_v15 }
 0x130   :  { %1399 = vmatprep.mubr.f32.mxu0 %v519_v59  ;;  %1562 = vmatprep.subr.bf16.mxu1 %v1731_v2 }
 0x131   :  { %1582 = vmatpush3.bf16.msra.mxu0 %v1581_v36 }
 0x132   :  { %1583 = vmatprep.subr.bf16.mxu0 %v1731_v2 }
 0x133   :  { %1400 = vmatmul.mubr.f32.gmra.mrb[14].mxu0 %v520_v60  ;;  %1564 = vmatpush3.bf16.msra.mxu1 %v1563_v18 }
 0x134   :  { %1402 = vmatprep.mubr.f32.mxu0 %v521_v61  ;;  %1565 = vmatprep.subr.bf16.mxu1 %v1731_v2 }
 0x135   :  { %1585 = vmatpush3.bf16.msra.mxu0 %v1584_v39 }
 0x136   :  { %1586 = vmatprep.subr.bf16.mxu0 %v1731_v2 }
 0x137   :  { %1403 = vmatmul.mubr.f32.gmra.mrb[16].mxu0 %v522_v62  ;;  %1567 = vmatpush3.bf16.msra.mxu1 %v1566_v21 }
 0x138   :  { %1472 = vmatprep.mubr.msk.f32.mxu0 %vm1729_vm0, %v1728_v0  ;;  %1568 = vmatprep.subr.bf16.mxu1 %v1731_v2 }
 0x139   :  { %1588 = vmatpush3.bf16.msra.mxu0 %v1587_v42 }
 0x13a   :  { %1589 = vmatprep.subr.bf16.mxu0 %v1731_v2 }
 0x13b   :  { %1570 = vmatpush3.bf16.msra.mxu1 %v1569_v24 }
 0x13c   :  { %1595 = vmatprep.subr.bf16.mxu1 %v1731_v2 }
 0x13d   :  { %1591 = vmatpush3.bf16.msra.mxu0 %v1590_v45 }
 0x13e   :  { %1592 = vmatprep.subr.bf16.mxu0 %v1731_v2 }
 0x1ee   :  { %v1383_v47 = vpop.f32.mrb[2].mxu0 }
 0x1ef   :  { %v618_v48 = vadd.f32 %v1383_v47, %v2033_v46  ;;  %v612_v49 = vpop.f32.mrb[3].mxu0 }
 0x1f0   :  { %v613_v51 = vadd.f32 %v2033_v46, %v612_v49 }
 0x1f1   :  { %v692_v52 = vmax.f32 %v618_v48, 0.0 }
 0x1f2   :  { %v691_v54 = vmax.f32 %v613_v51, 0.0  ;;  %v1386_v55 = vpop.f32.mrb[4].mxu0 }
 0x1f3   :  { %v711_v57 = vmul.f32 %v2039_v50, %v692_v52  ;;  %v628_v58 = vadd.f32 %v1386_v55, %v2033_v46  ;;  %v622_v59 = vpop.f32.mrb[5].mxu0 }
 0x1f4   :  { %v710_v60 = vmul.f32 %v2045_v53, %v691_v54  ;;  %v623_v61 = vadd.f32 %v2033_v46, %v622_v59 }
 0x1f5   :  { %v694_v62 = vmax.f32 %v628_v58, 0.0 }
 0x1f6   :  { %v726_v56 = vadd.f32 %v711_v57, %v710_v60  ;;  %v693_v63 = vmax.f32 %v623_v61, 0.0  ;;  %v1389_v1 = vpop.f32.mrb[6].mxu0 }
 0x1f7   :  { %v713_v4 = vmul.f32 %v2039_v50, %v694_v62  ;;  %v638_v5 = vadd.f32 %v1389_v1, %v2033_v46  ;;  %v632_v6 = vpop.f32.mrb[7].mxu0 }
 0x1f8   :  { %v727_v7 = vrot.slane %v726_v56, 4  ;;  %v712_v8 = vmul.f32 %v2045_v53, %v693_v63  ;;  %v633_v9 = vadd.f32 %v2033_v46, %v632_v6 }
 0x1f9   :  { %v696_v10 = vmax.f32 %v638_v5, 0.0 }
 0x1fa   :  { %v728_v11 = vadd.f32 %v727_v7, %v726_v56  ;;  %v733_v12 = vadd.f32 %v713_v4, %v712_v8  ;;  %v695_v13 = vmax.f32 %v633_v9, 0.0  ;;  %v1392_v14 = vpop.f32.mrb[8].mxu0 }
 0x1fb   :  { %v715_v15 = vmul.f32 %v2039_v50, %v696_v10  ;;  %v648_v16 = vadd.f32 %v1392_v14, %v2033_v46  ;;  %v642_v17 = vpop.f32.mrb[9].mxu0 }
 0x1fc   :  { %v729_v18 = vrot.slane %v728_v11, 2  ;;  %v734_v19 = vrot.slane %v733_v12, 4  ;;  %v714_v20 = vmul.f32 %v2045_v53, %v695_v13  ;;  %v643_v21 = vadd.f32 %v2033_v46, %v642_v17 }
 0x1fd   :  { %v698_v22 = vmax.f32 %v648_v16, 0.0 }
 0x1fe   :  { %v730_v23 = vadd.f32 %v729_v18, %v728_v11  ;;  %v735_v24 = vadd.f32 %v734_v19, %v733_v12  ;;  %v740_v25 = vadd.f32 %v715_v15, %v714_v20  ;;  %v697_v26 = vmax.f32 %v643_v21, 0.0  ;;  %v1395_v27 = vpop.f32.mrb[10].mxu0 }
 0x1ff   :  { %v717_v28 = vmul.f32 %v2039_v50, %v698_v22  ;;  %v658_v29 = vadd.f32 %v1395_v27, %v2033_v46  ;;  %v652_v30 = vpop.f32.mrb[11].mxu0 }
 0x200   :  { %v736_v31 = vrot.slane %v735_v24, 2  ;;  %v741_v32 = vrot.slane %v740_v25, 4  ;;  %v716_v33 = vmul.f32 %v2045_v53, %v697_v26  ;;  %v731_v34 = vrot.slane %v730_v23, 1 }
 0x201   :  { %v700_v35 = vmax.f32 %v658_v29, 0.0  ;;  %v653_v36 = vadd.f32 %v2033_v46, %v652_v30 }
 0x202   :  { %v737_v37 = vadd.f32 %v736_v31, %v735_v24  ;;  %v742_v38 = vadd.f32 %v741_v32, %v740_v25  ;;  %v747_v39 = vadd.f32 %v717_v28, %v716_v33  ;;  %v1398_v40 = vpop.f32.mrb[12].mxu0  ;;  %v732_v51 = vadd.f32 %v731_v34, %v730_v23 }
 0x203   :  { %v719_v41 = vmul.f32 %v2039_v50, %v700_v35  ;;  %v699_v42 = vmax.f32 %v653_v36, 0.0  ;;  %v668_v43 = vadd.f32 %v1398_v40, %v2033_v46  ;;  %v662_v44 = vpop.f32.mrb[13].mxu0 }
 0x204   :  { %v738_v45 = vrot.slane %v737_v37, 1  ;;  %v743_v47 = vrot.slane %v742_v38, 2  ;;  %v748_v48 = vrot.slane %v747_v39, 4  ;;  %v663_v49 = vadd.f32 %v2033_v46, %v662_v44 }
 0x205   :  { %v718_v52 = vmul.f32 %v2045_v53, %v699_v42  ;;  %v702_v54 = vmax.f32 %v668_v43, 0.0 }
 0x206   :  { %v739_v55 = vadd.f32 %v738_v45, %v737_v37  ;;  %v744_v57 = vadd.f32 %v743_v47, %v742_v38  ;;  %v749_v58 = vadd.f32 %v748_v48, %v747_v39  ;;  %v701_v59 = vmax.f32 %v663_v49, 0.0  ;;  %v1401_v60 = vpop.f32.mrb[14].mxu0 }
 0x207   :  { %v754_v61 = vadd.f32 %v719_v41, %v718_v52  ;;  %v721_v62 = vmul.f32 %v2039_v50, %v702_v54  ;;  %v678_v56 = vadd.f32 %v1401_v60, %v2033_v46  ;;  %v672_v63 = vpop.f32.mrb[15].mxu0 }
 0x208   :  { %v791_v1 = vsel %vm790_vm3, %v739_v55, %v732_v51  ;;  %v745_v4 = vrot.slane %v744_v57, 1  ;;  %v750_v5 = vrot.slane %v749_v58, 2  ;;  %v720_v6 = vmul.f32 %v2045_v53, %v701_v59  ;;  %v920_v59 = vld [vmem:[#allocation7 + $0x78] sm:$0xff] }
 0x209   :  { %v755_v7 = vrot.slane %v754_v61, 4  ;;  %v704_v8 = vmax.f32 %v678_v56, 0.0  ;;  %v673_v9 = vadd.f32 %v2033_v46, %v672_v63  ;;  %v1003_v56 = vld [vmem:[#allocation9 + $0x10] sm:$0xff] }
 0x20a   :  { %v746_v10 = vadd.f32 %v745_v4, %v744_v57  ;;  %v751_v11 = vadd.f32 %v750_v5, %v749_v58  ;;  %v761_v12 = vadd.f32 %v721_v62, %v720_v6  ;;  %v1404_v13 = vpop.f32.mrb[16].mxu0  ;;  %v919_v58 = vld [vmem:[#allocation7 + $0x70] sm:$0xff]  ;;  %v1002_v62 = vld [vmem:[#allocation9 + $0x8] sm:$0xff]  ;;  %v1005_v5 = vld [vmem:[#allocation9 + $0x20] sm:$0xff] }
 0x20b   :  { %v756_v14 = vadd.f32 %v755_v7, %v754_v61  ;;  %v723_v15 = vmul.f32 %v2039_v50, %v704_v8  ;;  %v703_v16 = vmax.f32 %v673_v9, 0.0  ;;  %v688_v17 = vadd.f32 %v1404_v13, %v2033_v46  ;;  %v682_v18 = vpop.f32.mrb[17].mxu0  ;;  %v1001_v61 = vld [vmem:[#allocation9] sm:$0xff]  ;;  %v1006_v6 = vld [vmem:[#allocation9 + $0x28] sm:$0xff]  ;;  %v1007_v8 = vld [vmem:[#allocation9 + $0x30] sm:$0xff] }
 0x20c   :  { %v793_v19 = vsel %vm792_vm4, %v746_v10, %v791_v1  ;;  %v752_v20 = vrot.slane %v751_v11, 1  ;;  %v762_v21 = vrot.slane %v761_v12, 4  ;;  %v683_v22 = vadd.f32 %v2033_v46, %v682_v18  ;;  %v1004_v1 = vld [vmem:[#allocation9 + $0x18] sm:$0xff]  ;;  %v1014_v18 = vld [vmem:[#allocation9 + $0x68] sm:$0xff] }
 0x20d   :  { %v757_v23 = vrot.slane %v756_v14, 2  ;;  %v722_v24 = vmul.f32 %v2045_v53, %v703_v16  ;;  %v706_v25 = vmax.f32 %v688_v17, 0.0  ;;  %v1593_v60 = vpack.c.bf16 %v920_v59, %v919_v58  ;;  %v1008_v9 = vld [vmem:[#allocation9 + $0x38] sm:$0xff]  ;;  %v1013_v17 = vld [vmem:[#allocation9 + $0x60] sm:$0xff] }
 0x20e   :  { %v753_v26 = vadd.f32 %v752_v20, %v751_v11  ;;  %v763_v27 = vadd.f32 %v762_v21, %v761_v12  ;;  %v705_v28 = vmax.f32 %v683_v22, 0.0  ;;  %v1596_v63 = vpack.c.bf16 %v1002_v62, %v1001_v61  ;;  %v1009_v11 = vld [vmem:[#allocation9 + $0x40] sm:$0xff]  ;;  %v1010_v12 = vld [vmem:[#allocation9 + $0x48] sm:$0xff] }
 0x20f   :  { %v758_v29 = vadd.f32 %v757_v23, %v756_v14  ;;  %v768_v30 = vadd.f32 %v723_v15, %v722_v24  ;;  %v725_v31 = vmul.f32 %v2039_v50, %v706_v25  ;;  %1594 = vmatpush3.bf16.msra.mxu0 %v1593_v60  ;;  %v1599_v4 = vpack.c.bf16 %v1004_v1, %v1003_v56  ;;  %v1011_v14 = vld [vmem:[#allocation9 + $0x50] sm:$0xff]  ;;  %v1012_v15 = vld [vmem:[#allocation9 + $0x58] sm:$0xff]  ;;  %v1209_v20 = vld [vmem:[%s2125_s9] ss:$0 sm:$0xff] }
 0x210   :  { %v764_v32 = vrot.slane %v763_v27, 2  ;;  %v724_v33 = vmul.f32 %v2045_v53, %v705_v28  ;;  %v795_v34 = vsel %vm794_vm5, %v753_v26, %v793_v19  ;;  %1510 = vmatprep.subr.mxu0 %v1728_v0  ;;  %v1602_v7 = vpack.c.bf16 %v1006_v6, %v1005_v5  ;;  %v1015_v25 = vld [vmem:[#allocation9 + $0x70] sm:$0xff]  ;;  %v1016_v26 = vld [vmem:[#allocation9 + $0x78] sm:$0xff]  ;;  %v1000_v28 = vld [vmem:[%s2128_s12] sm:$0xf] }
 0x211   :  { %v759_v35 = vrot.slane %v758_v29, 1  ;;  %v769_v36 = vrot.slane %v768_v30, 4  ;;  %v1605_v10 = vpack.c.bf16 %v1008_v9, %v1007_v8  ;;  %v1608_v13 = vpack.c.bf16 %v1010_v12, %v1009_v11 }
 0x212   :  { %v765_v37 = vadd.f32 %v764_v32, %v763_v27  ;;  %v775_v46 = vadd.f32 %v725_v31, %v724_v33  ;;  %v1611_v16 = vpack.c.bf16 %v1012_v15, %v1011_v14  ;;  %v1614_v19 = vpack.c.bf16 %v1014_v18, %v1013_v17 }
 0x213   :  { %v760_v38 = vadd.f32 %v759_v35, %v758_v29  ;;  %v770_v39 = vadd.f32 %v769_v36, %v768_v30  ;;  %v1617_v27 = vpack.c.bf16 %v1016_v26, %v1015_v25  ;;  %v1213_v35 = vld [vmem:[%s2130_s14] ss:$0 sm:$0xff] }
 0x214   :  { %v766_v40 = vrot.slane %v765_v37, 1  ;;  %v776_v41 = vrot.slane %v775_v46, 4 }
 0x215   :  { %v771_v42 = vrot.slane %v770_v39, 2  ;;  %v797_v43 = vsel %vm796_vm6, %v760_v38, %v795_v34 }
 0x216   :  { %v767_v44 = vadd.f32 %v766_v40, %v765_v37  ;;  %v777_v45 = vadd.f32 %v776_v41, %v775_v46 }
 0x217   :  { %v772_v47 = vadd.f32 %v771_v42, %v770_v39 }
 0x218   :  { %v778_v50 = vrot.slane %v777_v45, 2  ;;  %v799_v48 = vsel %vm798_vm7, %v767_v44, %v797_v43 }
 0x219   :  { %v773_v49 = vrot.slane %v772_v47, 1 }
 0x21a   :  { %v779_v53 = vadd.f32 %v778_v50, %v777_v45 }
 0x21b   :  { %v774_v51 = vadd.f32 %v773_v49, %v772_v47 }
 0x21c   :  { %v780_v52 = vrot.slane %v779_v53, 1 }
 0x21d   :  { %v801_v54 = vsel %vm800_vm8, %v774_v51, %v799_v48 }
 0x21e   :  { %v781_v55 = vadd.f32 %v780_v52, %v779_v53 }
 0x220   :  { %v803_v57 = vsel %vm802_vm9, %v781_v55, %v801_v54 }
 0x221   :  { %1438 = vmatmul.mubr.f32.vlgmr.msra.gmra.mrb[16].mxu1 %v803_v57 }
 0x222   :  { %1507 = vmatprep.mubr.msk.f32.mxu1 %vm1729_vm0, %v1728_v0  ;;  %1597 = vmatpush3.bf16.msra.mxu1 %v1596_v63 }
 0x223   :  { %1598 = vmatprep.subr.bf16.mxu1 %v1731_v2 }
 0x226   :  { %1600 = vmatpush3.bf16.msra.mxu1 %v1599_v4 }
 0x227   :  { %1601 = vmatprep.subr.bf16.mxu1 %v1731_v2 }
 0x22a   :  { %1603 = vmatpush3.bf16.msra.mxu1 %v1602_v7 }
 0x22b   :  { %1604 = vmatprep.subr.bf16.mxu1 %v1731_v2 }
 0x22e   :  { %1606 = vmatpush3.bf16.msra.mxu1 %v1605_v10 }
 0x22f   :  { %1607 = vmatprep.subr.bf16.mxu1 %v1731_v2 }
 0x232   :  { %1609 = vmatpush3.bf16.msra.mxu1 %v1608_v13 }
 0x233   :  { %1610 = vmatprep.subr.bf16.mxu1 %v1731_v2 }
 0x236   :  { %1612 = vmatpush3.bf16.msra.mxu1 %v1611_v16 }
 0x237   :  { %1613 = vmatprep.subr.bf16.mxu1 %v1731_v2 }
 0x23a   :  { %1615 = vmatpush3.bf16.msra.mxu1 %v1614_v19 }
 0x23b   :  { %1616 = vmatprep.subr.bf16.mxu1 %v1731_v2  ;;  %v1210_v2 = vld [vmem:[%s2127_s11] ss:$0 sm:$0xff]  ;;  %s1695_s11 = scalar_lea.vmem %s1179_s26, 128 }
 0x23c   :  { %p1696_p10 = scmp.ne.s32.totalorder %s1179_s26, %s1695_s11  ;;  %p1701_p12 = scmp.lt.s32.totalorder %s1695_s11, %s1695_s11 }
 0x23e   :  { %1618 = vmatpush3.bf16.msra.mxu1 %v1617_v27  ;;  %p1702_p13 = por %p1701_p12, %p1700_p11 }
 0x240   :  { %p1703_p0 = pnand %p1702_p13, %p1696_p10 }
 0x2f4   :  { %v900_v21 = vpop.f32.mrb[16].mxu1 }
 0x2f5   :  { %v901_v22 = vadd.f32 %v1209_v20, %v900_v21  ;;  %v1439_v23 = vpop.f32.mrb[17].mxu1 }
 0x2f7   :  { %v904_v24 = vmax.f32 %v901_v22, 0.0 }
 0x2f9   :  { %1473 = vmatmul.mubr.f32.vlgmr.msra.gmra.mrb[18].mxu0 %v904_v24 }
 0x2fa   :  { %1512 = vmatprep.mubr.msk.f32.mxu0 %vm1729_vm0, %v1728_v0  ;;  %1511 = vmatpush3.msk.msra.mxu0 %vm109_vm1, %v1000_v28 }
 0x2fd   :  { %1513 = vmatmul.mubr.msk.f32.vlgmr.msra.gmra.mrb[20].mxu0 %vm105_vm2, %v1877_v3 }
 0x3cc   :  { %v994_v29 = vpop.f32.mrb[18].mxu0 }
 0x3cd   :  { %v995_v30 = vadd.f32 %v1210_v2, %v994_v29  ;;  %v1474_v0 = vpop.f32.mrb[19].mxu0 }
 0x3cf   :  { %v998_v31 = vmax.f32 %v995_v30, 0.0 }
 0x3d0   :  { %v1159_v32 = vpop.f32.mrb[20].mxu0 }
 0x3d1   :  { %1508 = vmatmul.mubr.f32.vlgmr.msra.gmra.mrb[18].mxu1 %v998_v31  ;;  %v1514_v33 = vpop.f32.mrb[21].mxu0 }
 0x4a4   :  { %v1083_v34 = vpop.f32.mrb[18].mxu1 }
 0x4a5   :  { %v1160_v36 = vadd.f32 %v1159_v32, %v1083_v34  ;;  %v1509_v3 = vpop.f32.mrb[19].mxu1 }
 0x4a7   :  { %v1170_v37 = vadd.f32 %v1213_v35, %v1160_v36 }
 0x4a9   :  { %1171 = vst [vmem:[#allocation10] sm:$0xff] %v1170_v37 }
 0x4aa   :  { %1706 = shalt.err (!%p1703_p0)
}
 0x4ab   :  { %s1707_s21 = scalar_lea.hbm %s2131_s15, 128 }
 0x4ac   :  { %p1708_p1 = scmp.ne.s32.totalorder %s2131_s15, %s1707_s21  ;;  %p1711_p2 = scmp.lt.u32.totalorder %s1707_s21, %s2131_s15 }
 0x4ae   :  { %p1713_p3 = pnand %p1711_p2, %p1708_p1 }
 0x4b0   :  { %1716 = shalt.err (!%p1713_p3)
}
 0x4b1   :  { %1181 = dma.vmem_to_hbm [thread:$0]  %s1179_s26, 128, %s2131_s15, [#allocation6]  }
 0x4b2   :  { %1721 = dma.done.wait [#allocation6], 128  }
 0x4b3   :  { %1722 = vsyncadd [#allocation6], 4294967168 }
 0x4b4   :  { %1185 = vsyncpa [#allocation5], 1 }
 0x4b5   :  { %1186 = vsyncpa [#allocation8], 1 }
 0x4b6   :  { %1187 = vsyncpa [#allocation6], 1 }

</bundles_post_ra>
